<compile_context>
chip_gen: v7x
topology: tpu7x:2x2x1
jax: 0.10.0
libtpu: 0.0.40
codegen_flags: <defaults>
</compile_context>

<pallas_src>
import functools

import jax
import jax.numpy as jnp
from jax.experimental import pallas as pl
from jax.experimental.pallas import tpu as pltpu

IN_FEATURES = 10
OUT_FEATURES = 2
TILE_BATCH = 512  # 512-2048-row tiles reach ~85%+ of the HBM roofline.


def linear_kernel(x_ref, w_ref, b_ref, ot_ref):
    x = x_ref[...]          # [TB, 10]
    w = w_ref[...]          # [2, 10]   (PyTorch [out, in] layout)
    b = b_ref[...]          # [2, 1]
    # out_t[o, n] = sum_i w[o, i] * x[n, i]   (A @ B^T, contraction on last dims)
    acc = jax.lax.dot_general(
        w, x,
        dimension_numbers=(((1,), (1,)), ((), ())),
        preferred_element_type=jnp.float32,
    )                        # [2, TB] -- lane-dense along the batch tile
    ot_ref[...] = (acc + b).astype(ot_ref.dtype)


@functools.partial(jax.jit, static_argnames=("tile_batch",))
def my_model_forward(x, weight, bias, *, tile_batch=TILE_BATCH):
    """MyModel.forward: x @ weight.T + bias  (nn.Linear(10, 2)).

    x:      [batch, 10] float32
    weight: [2, 10]     float32  (PyTorch Linear layout: [out, in])
    bias:   [2]         float32
    """
    batch = x.shape[0]
    tb = tile_batch
    padded = pl.cdiv(batch, tb) * tb
    if padded != batch:
        # Glue: pad the batch up to a whole number of tiles; padded rows are
        # computed (cheap, hidden under DMA) and sliced away at the end.
        x = jnp.pad(x, ((0, padded - batch), (0, 0)))
    b2d = bias.reshape(OUT_FEATURES, 1)  # broadcasts over the lane (batch) dim

    out_t = pl.pallas_call(
        linear_kernel,
        out_shape=jax.ShapeDtypeStruct((OUT_FEATURES, padded), x.dtype),
        grid=(padded // tb,),
        in_specs=[
            pl.BlockSpec((tb, IN_FEATURES), lambda i: (i, 0)),
            # Constant block index -> weight/bias stay VMEM-resident (no
            # re-DMA of the 80-byte weight every grid step).
            pl.BlockSpec((OUT_FEATURES, IN_FEATURES), lambda i: (0, 0)),
            pl.BlockSpec((OUT_FEATURES, 1), lambda i: (0, 0)),
        ],
        out_specs=pl.BlockSpec((OUT_FEATURES, tb), lambda i: (0, i)),
        compiler_params=pltpu.CompilerParams(
            dimension_semantics=("parallel",)),
    )(x, weight, b2d)

    # One transpose + slice outside the kernel to restore the [batch, 2] layout.
    return out_t.T[:batch]


if __name__ == "__main__":
    key = jax.random.PRNGKey(0)
    k_x, k_w, k_b = jax.random.split(key, 3)

    batch = 8
    # Deterministic synthetic parameters (PyTorch Linear(10, 2) shapes).
    bound = 1.0 / (IN_FEATURES ** 0.5)
    weight = jax.random.uniform(
        k_w, (OUT_FEATURES, IN_FEATURES), jnp.float32, -bound, bound)
    bias = jax.random.uniform(
        k_b, (OUT_FEATURES,), jnp.float32, -bound, bound)

    x = jax.random.normal(k_x, (batch, IN_FEATURES), jnp.float32)

    out = jax.block_until_ready(my_model_forward(x, weight, bias))

    # Correctness check against plain-JAX reference of the PyTorch forward.
    ref = x @ weight.T + bias
    assert out.shape == (batch, OUT_FEATURES)
    assert jnp.allclose(out, ref, atol=1e-5, rtol=1e-5)

    print("KERNEL_OK")
</pallas_src>

<mosaic_0001>
module attributes {stable_mosaic.version = 11 : i64} {
  func.func @linear_kernel(%arg0: i32, %arg1: memref<512x10xf32, #tpu.memory_space<vmem>>, %arg2: memref<2x10xf32, #tpu.memory_space<vmem>>, %arg3: memref<2x1xf32, #tpu.memory_space<vmem>>, %arg4: memref<2x512xf32, #tpu.memory_space<vmem>>) attributes {dimension_semantics = [#tpu.dimension_semantics<parallel>], iteration_bounds = array<i64: 1>, scalar_prefetch = 0 : i64, scratch_operands = 0 : i64, tpu.core_type = #tpu.core_type<tc>, window_params = [{transform_indices = @transform_0, window_bounds = array<i64: 512, 10>}, {pipeline_mode = #tpu.pipeline_mode<synchronous>, transform_indices = @transform_1, window_bounds = array<i64: 2, 10>}, {pipeline_mode = #tpu.pipeline_mode<synchronous>, transform_indices = @transform_2, window_bounds = array<i64: 2, 1>}, {transform_indices = @transform_3, window_bounds = array<i64: 2, 512>}]} {
    %c0 = arith.constant 0 : index
    %c0_0 = arith.constant 0 : index
    %0 = vector.load %arg1[%c0, %c0_0] : memref<512x10xf32, #tpu.memory_space<vmem>>, vector<512x10xf32>
    %c0_1 = arith.constant 0 : index
    %c0_2 = arith.constant 0 : index
    %1 = vector.load %arg2[%c0_1, %c0_2] : memref<2x10xf32, #tpu.memory_space<vmem>>, vector<2x10xf32>
    %c0_3 = arith.constant 0 : index
    %c0_4 = arith.constant 0 : index
    %2 = vector.load %arg3[%c0_3, %c0_4] : memref<2x1xf32, #tpu.memory_space<vmem>>, vector<2x1xf32>
    %cst = arith.constant dense<0.000000e+00> : vector<2x512xf32>
    %3 = tpu.matmul %1, %0, %cst {dimension_numbers = #tpu.dot_dimension_numbers<[1], [1], [0], [0], [0, 0, 1, 0], [], []>} : vector<2x10xf32>, vector<512x10xf32>, vector<2x512xf32> -> vector<2x512xf32>
    %4 = vector.broadcast %2 : vector<2x1xf32> to vector<2x512xf32>
    %5 = arith.addf %3, %4 : vector<2x512xf32>
    %c0_5 = arith.constant 0 : index
    %c0_6 = arith.constant 0 : index
    %6 = vector.load %arg4[%c0_5, %c0_6] : memref<2x512xf32, #tpu.memory_space<vmem>>, vector<2x512xf32>
    tpu.vector_store %arg4[%c0_5, %c0_6], %5 {strides = array<i32>} : memref<2x512xf32, #tpu.memory_space<vmem>>, vector<2x512xf32>,
    return
  }
  func.func @transform_0(%arg0: i32) -> (i32, i32) {
    %c0_i32 = arith.constant 0 : i32
    %c0_i32_0 = arith.constant 0 : i32
    return %arg0, %c0_i32 : i32, i32
  }
  func.func @transform_1(%arg0: i32) -> (i32, i32) {
    %c0_i32 = arith.constant 0 : i32
    %c0_i32_0 = arith.constant 0 : i32
    %c0_i32_1 = arith.constant 0 : i32
    return %c0_i32, %c0_i32_0 : i32, i32
  }
  func.func @transform_2(%arg0: i32) -> (i32, i32) {
    %c0_i32 = arith.constant 0 : i32
    %c0_i32_0 = arith.constant 0 : i32
    %c0_i32_1 = arith.constant 0 : i32
    return %c0_i32, %c0_i32_0 : i32, i32
  }
  func.func @transform_3(%arg0: i32) -> (i32, i32) {
    %c0_i32 = arith.constant 0 : i32
    %c0_i32_0 = arith.constant 0 : i32
    return %c0_i32, %arg0 : i32, i32
  }
}

</mosaic_0001>

<bundles_post_ra>
// kernel: my_model_forward.1
= control target key start
LH: loop header
LB: loop body
LE: loop exit
PB: predicated region body
PF: predicated region fallthrough
CT: control target
= control target key end

     0   :  { %vm85_vm0 = vcmask 80896   ;;  %v683_v3 = vmov 0   ;;  %s986_s0 = inlined_call_operand.vmem [shape: f32[512,10], index: 0, kind: input, shape index: {}]   ;;  %s987_s1 = inlined_call_operand.vmem [shape: f32[2,10], index: 1, kind: input, shape index: {}]   ;;  %s988_s2 = inlined_call_operand.vmem [shape: f32[2,1], index: 2, kind: input, shape index: {}]   ;;  %s989_s3 = inlined_call_operand.vmem [shape: f32[2,512], index: 3, kind: output, shape index: {}]  }
   0x1   :  { %v30_v0 = vld [vmem:[%s986_s0 + $0x80] sm:$0xff]  ;;  %v31_v1 = vld [vmem:[%s986_s0 + $0x88] sm:$0xff]  ;;  %vm713_vm1 = vmpackc.low %vm85_vm0, %vm85_vm0  ;;  %682 = vset.pattern.permute.xlu0 %v683_v3 }
   0x2   :  { %v584_v4 = vpack.c.bf16 %v31_v1, %v30_v0  ;;  %v62_v5 = vld [vmem:[%s986_s0 + $0x180] sm:$0xff]  ;;  %v63_v6 = vld [vmem:[%s986_s0 + $0x188] sm:$0xff]  ;;  %v32_v14 = vld [vmem:[%s986_s0 + $0x90] sm:$0xff] }
   0x3   :  { %v14_v7 = vld [vmem:[%s986_s0] sm:$0xff]  ;;  %v632_v8 = vpack.c.bf16 %v63_v6, %v62_v5  ;;  %v15_v9 = vld [vmem:[%s986_s0 + $0x8] sm:$0xff]  ;;  %v33_v15 = vld [vmem:[%s986_s0 + $0x98] sm:$0xff] }
   0x4   :  { %v46_v10 = vld [vmem:[%s986_s0 + $0x100] sm:$0xff]  ;;  %v47_v11 = vld [vmem:[%s986_s0 + $0x108] sm:$0xff]  ;;  %586 = vmatprep.subr.msk.bf16.mxu0 %vm713_vm1, %v584_v4  ;;  %v587_v12 = vpack.c.bf16 %v15_v9, %v14_v7  ;;  %v64_v16 = vld [vmem:[%s986_s0 + $0x190] sm:$0xff]  ;;  %v590_v17 = vpack.c.bf16 %v33_v15, %v32_v14 }
   0x5   :  { %v635_v13 = vpack.c.bf16 %v47_v11, %v46_v10  ;;  %634 = vmatprep.subr.msk.bf16.mxu1 %vm713_vm1, %v632_v8  ;;  %v65_v18 = vld [vmem:[%s986_s0 + $0x198] sm:$0xff]  ;;  %v16_v20 = vld [vmem:[%s986_s0 + $0x10] sm:$0xff]  ;;  %v34_v24 = vld [vmem:[%s986_s0 + $0xa0] sm:$0xff] }
   0x6   :  { %589 = vmatpush3.bf16.xpose.msk.msra.mxu0 %vm713_vm1, %v587_v12  ;;  %v638_v19 = vpack.c.bf16 %v65_v18, %v64_v16  ;;  %v17_v21 = vld [vmem:[%s986_s0 + $0x18] sm:$0xff]  ;;  %v48_v22 = vld [vmem:[%s986_s0 + $0x110] sm:$0xff]  ;;  %v35_v25 = vld [vmem:[%s986_s0 + $0xa8] sm:$0xff] }
   0x7   :  { %637 = vmatpush3.bf16.xpose.msk.msra.mxu1 %vm713_vm1, %v635_v13  ;;  %592 = vmatprep.subr.msk.bf16.mxu0 %vm713_vm1, %v590_v17  ;;  %v49_v23 = vld [vmem:[%s986_s0 + $0x118] sm:$0xff]  ;;  %v66_v26 = vld [vmem:[%s986_s0 + $0x1a0] sm:$0xff]  ;;  %v67_v27 = vld [vmem:[%s986_s0 + $0x1a8] sm:$0xff]  ;;  %v593_v28 = vpack.c.bf16 %v17_v21, %v16_v20  ;;  %v596_v30 = vpack.c.bf16 %v35_v25, %v34_v24 }
   0x8   :  { %640 = vmatprep.subr.msk.bf16.mxu1 %vm713_vm1, %v638_v19  ;;  %v641_v29 = vpack.c.bf16 %v49_v23, %v48_v22  ;;  %v644_v31 = vpack.c.bf16 %v67_v27, %v66_v26  ;;  %v18_v32 = vld [vmem:[%s986_s0 + $0x20] sm:$0xff]  ;;  %v19_v33 = vld [vmem:[%s986_s0 + $0x28] sm:$0xff]  ;;  %v36_v36 = vld [vmem:[%s986_s0 + $0xb0] sm:$0xff] }
   0x9   :  { %v50_v34 = vld [vmem:[%s986_s0 + $0x120] sm:$0xff]  ;;  %v51_v35 = vld [vmem:[%s986_s0 + $0x128] sm:$0xff]  ;;  %v37_v37 = vld [vmem:[%s986_s0 + $0xb8] sm:$0xff]  ;;  %v599_v40 = vpack.c.bf16 %v19_v33, %v18_v32 }
   0xa   :  { %v68_v38 = vld [vmem:[%s986_s0 + $0x1b0] sm:$0xff]  ;;  %v69_v39 = vld [vmem:[%s986_s0 + $0x1b8] sm:$0xff]  ;;  %v647_v41 = vpack.c.bf16 %v51_v35, %v50_v34  ;;  %v602_v42 = vpack.c.bf16 %v37_v37, %v36_v36  ;;  %v831_v47 = vld [vmem:[%s987_s1] sm:$0x3]  ;;  %v684_v37 = vmov 1983009808  }
   0xb   :  { %v650_v43 = vpack.c.bf16 %v69_v39, %v68_v38  ;;  %v20_v44 = vld [vmem:[%s986_s0 + $0x30] sm:$0xff]  ;;  %v21_v45 = vld [vmem:[%s986_s0 + $0x38] sm:$0xff]  ;;  %v38_v49 = vld [vmem:[%s986_s0 + $0xc0] sm:$0xff]  ;;  %548 = vmatprep.mubr.msk.f32.mxu0 %vm85_vm0, %v831_v47  ;;  %582 = vmatprep.mubr.msk.f32.mxu1 %vm85_vm0, %v831_v47  ;;  %v430_v38 = vunpack.c.l.s4 %v684_v37  ;;  %v432_v39 = vlaneseq }
   0xc   :  { %v52_v46 = vld [vmem:[%s986_s0 + $0x130] sm:$0xff]  ;;  %v53_v48 = vld [vmem:[%s986_s0 + $0x138] sm:$0xff]  ;;  %v79_v50 = vld [vmem:[%s988_s2] sm:$0x3]  ;;  %v605_v54 = vpack.c.bf16 %v21_v45, %v20_v44 }
   0xd   :  { %v39_v51 = vld [vmem:[%s986_s0 + $0xc8] sm:$0xff]  ;;  %v70_v52 = vld [vmem:[%s986_s0 + $0x1c0] sm:$0xff]  ;;  %82 = vperm.xlu0 %682, %v79_v50   ;;  %v653_v55 = vpack.c.bf16 %v53_v48, %v52_v46  ;;  %v40_v62 = vld [vmem:[%s986_s0 + $0xd0] sm:$0xff] }
   0xe   :  { %595 = vmatpush3.bf16.xpose.msk.msra.mxu0 %vm713_vm1, %v593_v28  ;;  %v71_v53 = vld [vmem:[%s986_s0 + $0x1c8] sm:$0xff]  ;;  %v608_v56 = vpack.c.bf16 %v39_v51, %v38_v49  ;;  %v22_v58 = vld [vmem:[%s986_s0 + $0x40] sm:$0xff]  ;;  %v41_v63 = vld [vmem:[%s986_s0 + $0xd8] sm:$0xff] }
   0xf   :  { %643 = vmatpush3.bf16.xpose.msk.msra.mxu1 %vm713_vm1, %v641_v29  ;;  %598 = vmatprep.subr.msk.bf16.mxu0 %vm713_vm1, %v596_v30  ;;  %v656_v57 = vpack.c.bf16 %v71_v53, %v70_v52  ;;  %v23_v59 = vld [vmem:[%s986_s0 + $0x48] sm:$0xff]  ;;  %v54_v60 = vld [vmem:[%s986_s0 + $0x140] sm:$0xff]  ;;  %v72_v0 = vld [vmem:[%s986_s0 + $0x1d0] sm:$0xff]  ;;  %v614_v5 = vpack.c.bf16 %v41_v63, %v40_v62 }
  0x10   :  { %646 = vmatprep.subr.msk.bf16.mxu1 %vm713_vm1, %v644_v31  ;;  %v55_v61 = vld [vmem:[%s986_s0 + $0x148] sm:$0xff]  ;;  %v73_v1 = vld [vmem:[%s986_s0 + $0x1d8] sm:$0xff]  ;;  %v611_v3 = vpack.c.bf16 %v23_v59, %v22_v58  ;;  %v24_v7 = vld [vmem:[%s986_s0 + $0x50] sm:$0xff] }
  0x11   :  { %v659_v4 = vpack.c.bf16 %v55_v61, %v54_v60  ;;  %v662_v6 = vpack.c.bf16 %v73_v1, %v72_v0  ;;  %v25_v8 = vld [vmem:[%s986_s0 + $0x58] sm:$0xff]  ;;  %v56_v9 = vld [vmem:[%s986_s0 + $0x150] sm:$0xff]  ;;  %v42_v11 = vld [vmem:[%s986_s0 + $0xe0] sm:$0xff] }
  0x12   :  { %v57_v10 = vld [vmem:[%s986_s0 + $0x158] sm:$0xff]  ;;  %v43_v12 = vld [vmem:[%s986_s0 + $0xe8] sm:$0xff]  ;;  %v74_v13 = vld [vmem:[%s986_s0 + $0x1e0] sm:$0xff]  ;;  %v617_v15 = vpack.c.bf16 %v25_v8, %v24_v7 }
  0x13   :  { %v75_v14 = vld [vmem:[%s986_s0 + $0x1e8] sm:$0xff]  ;;  %v665_v16 = vpack.c.bf16 %v57_v10, %v56_v9  ;;  %v620_v17 = vpack.c.bf16 %v43_v12, %v42_v11  ;;  %v26_v19 = vld [vmem:[%s986_s0 + $0x60] sm:$0xff]  ;;  %v44_v23 = vld [vmem:[%s986_s0 + $0xf0] sm:$0xff] }
  0x14   :  { %v668_v18 = vpack.c.bf16 %v75_v14, %v74_v13  ;;  %v27_v20 = vld [vmem:[%s986_s0 + $0x68] sm:$0xff]  ;;  %v58_v21 = vld [vmem:[%s986_s0 + $0x160] sm:$0xff]  ;;  %v45_v24 = vld [vmem:[%s986_s0 + $0xf8] sm:$0xff] }
  0x15   :  { %v59_v22 = vld [vmem:[%s986_s0 + $0x168] sm:$0xff]  ;;  %v76_v25 = vld [vmem:[%s986_s0 + $0x1f0] sm:$0xff]  ;;  %v77_v26 = vld [vmem:[%s986_s0 + $0x1f8] sm:$0xff]  ;;  %v623_v27 = vpack.c.bf16 %v27_v20, %v26_v19  ;;  %v626_v29 = vpack.c.bf16 %v45_v24, %v44_v23 }
  0x16   :  { %601 = vmatpush3.bf16.xpose.msk.msra.mxu0 %vm713_vm1, %v599_v40  ;;  %v671_v28 = vpack.c.bf16 %v59_v22, %v58_v21  ;;  %v674_v30 = vpack.c.bf16 %v77_v26, %v76_v25  ;;  %v28_v31 = vld [vmem:[%s986_s0 + $0x70] sm:$0xff]  ;;  %v29_v32 = vld [vmem:[%s986_s0 + $0x78] sm:$0xff] }
  0x17   :  { %649 = vmatpush3.bf16.xpose.msk.msra.mxu1 %vm713_vm1, %v647_v41  ;;  %604 = vmatprep.subr.msk.bf16.mxu0 %vm713_vm1, %v602_v42  ;;  %v60_v33 = vld [vmem:[%s986_s0 + $0x170] sm:$0xff]  ;;  %v61_v34 = vld [vmem:[%s986_s0 + $0x178] sm:$0xff]  ;;  %v629_v35 = vpack.c.bf16 %v29_v32, %v28_v31  ;;  %v431_v41 = vunpack.c.0.s8 %v430_v38  ;;  %v433_v42 = vshrl.u32 %v432_v39, 7 }
  0x18   :  { %652 = vmatprep.subr.msk.bf16.mxu1 %vm713_vm1, %v650_v43  ;;  %v677_v36 = vpack.c.bf16 %v61_v34, %v60_v33 }
  0x19   :  { %v434_v50 = vsub.s32 %v431_v41, %v433_v42 }
  0x1e   :  { %607 = vmatpush3.bf16.xpose.msk.msra.mxu0 %vm713_vm1, %v605_v54 }
  0x1f   :  { %655 = vmatpush3.bf16.xpose.msk.msra.mxu1 %vm713_vm1, %v653_v55  ;;  %610 = vmatprep.subr.msk.bf16.mxu0 %vm713_vm1, %v608_v56 }
  0x20   :  { %658 = vmatprep.subr.msk.bf16.mxu1 %vm713_vm1, %v656_v57 }
  0x26   :  { %613 = vmatpush3.bf16.xpose.msk.msra.mxu0 %vm713_vm1, %v611_v3 }
  0x27   :  { %661 = vmatpush3.bf16.xpose.msk.msra.mxu1 %vm713_vm1, %v659_v4  ;;  %616 = vmatprep.subr.msk.bf16.mxu0 %vm713_vm1, %v614_v5 }
  0x28   :  { %664 = vmatprep.subr.msk.bf16.mxu1 %vm713_vm1, %v662_v6 }
  0x2e   :  { %619 = vmatpush3.bf16.xpose.msk.msra.mxu0 %vm713_vm1, %v617_v15 }
  0x2f   :  { %667 = vmatpush3.bf16.xpose.msk.msra.mxu1 %vm713_vm1, %v665_v16  ;;  %622 = vmatprep.subr.msk.bf16.mxu0 %vm713_vm1, %v620_v17 }
  0x30   :  { %670 = vmatprep.subr.msk.bf16.mxu1 %vm713_vm1, %v668_v18 }
  0x36   :  { %625 = vmatpush3.bf16.xpose.msk.msra.mxu0 %vm713_vm1, %v623_v27 }
  0x37   :  { %673 = vmatpush3.bf16.xpose.msk.msra.mxu1 %vm713_vm1, %v671_v28  ;;  %628 = vmatprep.subr.msk.bf16.mxu0 %vm713_vm1, %v626_v29 }
  0x38   :  { %676 = vmatprep.subr.msk.bf16.mxu1 %vm713_vm1, %v674_v30 }
  0x3e   :  { %631 = vmatpush3.bf16.xpose.msk.msra.mxu0 %vm713_vm1, %v629_v35 }
  0x3f   :  { %679 = vmatpush3.bf16.xpose.msk.msra.mxu1 %vm713_vm1, %v677_v36 }
  0x45   :  { %549 = vmatmul.mubr.msk.f32.vlgmr.msra.gmra.mrb[0].mxu0 %vm85_vm0, %v831_v47 }
  0x46   :  { %583 = vmatmul.mubr.msk.f32.vlgmr.msra.gmra.mrb[0].mxu1 %vm85_vm0, %v831_v47 }
  0x8c   :  { %v83_v40 = vpop.permute.xlu0 %82 }
 0x118   :  { %v347_v43 = vpop.f32.mrb[0].mxu0 }
 0x119   :  { %v418_v44 = vpop.f32.mrb[0].mxu1  ;;  %v348_v45 = vadd.f32 %v347_v43, %v83_v40  ;;  %v349_v48 = vpop.f32.mrb[1].mxu0 }
 0x11a   :  { %v419_v46 = vadd.f32 %v418_v44, %v83_v40  ;;  %v420_v49 = vpop.f32.mrb[1].mxu1  ;;  %v350_v2 = vadd.f32 %v349_v48, %v83_v40 }
 0x11b   :  { %v421_v51 = vadd.f32 %v420_v49, %v83_v40 }
 0x11c   :  { %v427_v52 = vcombine.low %v348_v45, %v350_v2 }
 0x11d   :  { %v428_v53 = vcombine.low %v419_v46, %v421_v51 }
 0x11e   :  { %v435_v54 = vrot.slane %v427_v52, %v434_v50 }
 0x11f   :  { %v442_v55 = vrot.slane %v428_v53, %v434_v50 }
 0x121   :  { %v443_v47 = vcombine.low %v435_v54, %v442_v55 }
 0x123   :  { %445 = vst [vmem:[%s989_s3] sm:$0xff] %v443_v47 }

</bundles_post_ra>
